<compile_context>
chip_gen: v7x
topology: tpu7x:2x2x1
jax: 0.10.0
libtpu: 0.0.40
codegen_flags: <defaults>
</compile_context>

<pallas_src>
import numpy as np
import jax
import jax.numpy as jnp
from jax.experimental import pallas as pl
from jax.experimental.pallas import tpu as pltpu


# ----------------------------- Pallas kernel --------------------------------

def _residual_block_kernel(x_ref, w1_ref, b1_ref, w2_ref, b2_ref, o_ref):
    """Fused ResidualBlock: o = x + conv2(relu(conv1(x))).

    Layout: the per-image feature map is (H, W*C) with column index w*C + c,
    so the lane axis is W*C (=128 here) and every access is lane-dense.

      x_ref  : (H, W*C)       one batch element
      w*_ref : (3, W*C, W*C)  banded conv weights, one (W*Cin, W*Cout) band per
                              row tap kh (kw taps + W zero-pad folded in)
      b*_ref : (1, W*C)       bias tiled along W (b[w*C + c] = bias[c])
      o_ref  : (H, W*C)       output
    """
    f32 = jnp.float32
    xv = x_ref[...]
    H = xv.shape[0]

    # Row-shift matrices (applied on the MXU): (s_dn @ a)[i] = a[i-1] with a
    # zero row at the top, (s_up @ a)[i] = a[i+1] with a zero row at the
    # bottom.  These realize the H-direction zero padding of the 3x3 conv.
    ri = jax.lax.broadcasted_iota(jnp.int32, (H, H), 0)
    ci = jax.lax.broadcasted_iota(jnp.int32, (H, H), 1)
    s_dn = jnp.where(ci == ri - 1, 1.0, 0.0).astype(f32)
    s_up = jnp.where(ci == ri + 1, 1.0, 0.0).astype(f32)

    def conv3x3(a, w_ref, b_ref):
        # row tap kh=0 needs rows i-1, kh=1 rows i, kh=2 rows i+1.
        a_dn = jnp.dot(s_dn, a, preferred_element_type=f32)
        a_up = jnp.dot(s_up, a, preferred_element_type=f32)
        acc = jnp.dot(a_dn, w_ref[0], preferred_element_type=f32)
        acc = acc + jnp.dot(a, w_ref[1], preferred_element_type=f32)
        acc = acc + jnp.dot(a_up, w_ref[2], preferred_element_type=f32)
        return acc + b_ref[...]

    h = jnp.maximum(conv3x3(xv, w1_ref, b1_ref), 0.0)   # conv1 -> ReLU
    y = conv3x3(h, w2_ref, b2_ref)                      # conv2
    o_ref[...] = xv + y                                 # residual add


# ----------------------------- wrapper ---------------------------------------

def residual_block_forward(x_nchw, packed):
    """x_nchw: (N, C, H, W) float32 -> (N, C, H, W) float32."""
    N, C, H, W = x_nchw.shape
    WC = W * C
    # NCHW -> lane-dense (N, H, W*C); pure layout glue outside the kernel.
    x2d = jnp.transpose(x_nchw, (0, 2, 3, 1)).reshape(N, H, WC)

    out2d = pl.pallas_call(
        _residual_block_kernel,
        out_shape=jax.ShapeDtypeStruct((N, H, WC), jnp.float32),
        grid=(N,),
        in_specs=[
            pl.BlockSpec((None, H, WC), lambda n: (n, 0, 0)),
            pl.BlockSpec((3, WC, WC), lambda n: (0, 0, 0)),
            pl.BlockSpec((1, WC), lambda n: (0, 0)),
            pl.BlockSpec((3, WC, WC), lambda n: (0, 0, 0)),
            pl.BlockSpec((1, WC), lambda n: (0, 0)),
        ],
        out_specs=pl.BlockSpec((None, H, WC), lambda n: (n, 0, 0)),
        compiler_params=pltpu.CompilerParams(
            dimension_semantics=("parallel",)),    # batch across TCs on v7x
    )(x2d, packed["w1b"], packed["b1r"], packed["w2b"], packed["b2r"])

    return jnp.transpose(out2d.reshape(N, H, W, C), (0, 3, 1, 2))


# --------------------- parameter init & packing (glue) -----------------------

def init_params(key, channels):
    k1, k2, k3, k4 = jax.random.split(key, 4)
    scale = 1.0 / (3 * 3 * channels) ** 0.5
    return {
        "w1": scale * jax.random.normal(k1, (3, 3, channels, channels), jnp.float32),
        "b1": 0.05 * jax.random.normal(k2, (channels,), jnp.float32),
        "w2": scale * jax.random.normal(k3, (3, 3, channels, channels), jnp.float32),
        "b2": 0.05 * jax.random.normal(k4, (channels,), jnp.float32),
    }


def _band_conv_weight(w_hwio, width):
    """Fold the kw taps + W-direction zero padding of a KxK 'same' conv into a
    banded (W*Cin, W*Cout) matrix per row tap kh, so one image row becomes a
    single lane-dense matmul.  Built once at init."""
    K = w_hwio.shape[0]
    cin, cout = w_hwio.shape[2], w_hwio.shape[3]
    w_np = np.asarray(w_hwio)
    band = np.zeros((K, width * cin, width * cout), np.float32)
    for wout in range(width):
        for kw in range(K):
            win = wout + kw - K // 2
            if 0 <= win < width:
                band[:, win * cin:(win + 1) * cin,
                     wout * cout:(wout + 1) * cout] = w_np[:, kw]
    return jnp.asarray(band)


def pack_params(raw, width):
    return {
        "w1b": _band_conv_weight(raw["w1"], width),
        "b1r": jnp.tile(raw["b1"].reshape(1, -1), (1, width)),
        "w2b": _band_conv_weight(raw["w2"], width),
        "b2r": jnp.tile(raw["b2"].reshape(1, -1), (1, width)),
    }


# ----------------------------- pure-JAX reference ----------------------------

def residual_block_reference(x_nchw, raw):
    x = jnp.transpose(x_nchw, (0, 2, 3, 1))   # NHWC

    def conv(a, w, b):
        y = jax.lax.conv_general_dilated(
            a, w, window_strides=(1, 1), padding="SAME",
            dimension_numbers=("NHWC", "HWIO", "NHWC"),
            precision=jax.lax.Precision.HIGHEST)
        return y + b.reshape(1, 1, 1, -1)

    h = jnp.maximum(conv(x, raw["w1"], raw["b1"]), 0.0)
    y = x + conv(h, raw["w2"], raw["b2"])
    return jnp.transpose(y, (0, 3, 1, 2))


# ----------------------------- main -------------------------------------------

if __name__ == "__main__":
    N, C, H, W = 2, 8, 16, 16          # W * C = 128 -> exactly one lane tile
    key = jax.random.PRNGKey(0)
    pkey, xkey = jax.random.split(key)

    raw = init_params(pkey, C)
    packed = pack_params(raw, W)
    x = jax.random.normal(xkey, (N, C, H, W), jnp.float32)

    fwd = jax.jit(residual_block_forward)
    y = fwd(x, packed)
    jax.block_until_ready(y)

    y_ref = residual_block_reference(x, raw)
    assert y.shape == x.shape and y.dtype == jnp.float32
    err = float(jnp.max(jnp.abs(y - y_ref)))
    assert err < 2e-3, f"mismatch vs reference: max abs err = {err}"
    print("KERNEL_OK")
</pallas_src>

<mosaic_0001>
module attributes {stable_mosaic.version = 11 : i64} {
  func.func @_residual_block_kernel(%arg0: i32, %arg1: memref<1x16x128xf32, #tpu.memory_space<vmem>>, %arg2: memref<3x128x128xf32, #tpu.memory_space<vmem>>, %arg3: memref<1x128xf32, #tpu.memory_space<vmem>>, %arg4: memref<3x128x128xf32, #tpu.memory_space<vmem>>, %arg5: memref<1x128xf32, #tpu.memory_space<vmem>>, %arg6: memref<1x16x128xf32, #tpu.memory_space<vmem>>) attributes {dimension_semantics = [#tpu.dimension_semantics<parallel>], iteration_bounds = array<i64: 2>, scalar_prefetch = 0 : i64, scratch_operands = 0 : i64, tpu.core_type = #tpu.core_type<tc>, window_params = [{transform_indices = @transform_0, window_bounds = array<i64: 1, 16, 128>}, {pipeline_mode = #tpu.pipeline_mode<synchronous>, transform_indices = @transform_1, window_bounds = array<i64: 3, 128, 128>}, {pipeline_mode = #tpu.pipeline_mode<synchronous>, transform_indices = @transform_2, window_bounds = array<i64: 1, 128>}, {pipeline_mode = #tpu.pipeline_mode<synchronous>, transform_indices = @transform_3, window_bounds = array<i64: 3, 128, 128>}, {pipeline_mode = #tpu.pipeline_mode<synchronous>, transform_indices = @transform_4, window_bounds = array<i64: 1, 128>}, {transform_indices = @transform_5, window_bounds = array<i64: 1, 16, 128>}]} {
    %c0 = arith.constant 0 : index
    %c0_0 = arith.constant 0 : index
    %c0_1 = arith.constant 0 : index
    %0 = vector.load %arg1[%c0, %c0_0, %c0_1] : memref<1x16x128xf32, #tpu.memory_space<vmem>>, vector<1x16x128xf32>
    %1 = vector.shape_cast %0 : vector<1x16x128xf32> to vector<16x128xf32>
    %2 = tpu.iota {dimensions = array<i32: 0>} : vector<16x16xi32>
    %3 = tpu.iota {dimensions = array<i32: 1>} : vector<16x16xi32>
    %c1_i32 = arith.constant 1 : i32
    %4 = vector.broadcast %c1_i32 : i32 to vector<16x16xi32>
    %5 = arith.subi %2, %4 : vector<16x16xi32>
    %6 = arith.cmpi eq, %3, %5 : vector<16x16xi32>
    %cst = arith.constant 1.000000e+00 : f32
    %cst_2 = arith.constant 0.000000e+00 : f32
    %7 = vector.broadcast %cst : f32 to vector<16x16xf32>
    %8 = vector.broadcast %cst_2 : f32 to vector<16x16xf32>
    %9 = arith.select %6, %7, %8 : vector<16x16xi1>, vector<16x16xf32>
    %c1_i32_3 = arith.constant 1 : i32
    %10 = vector.broadcast %c1_i32_3 : i32 to vector<16x16xi32>
    %11 = arith.addi %2, %10 : vector<16x16xi32>
    %12 = arith.cmpi eq, %3, %11 : vector<16x16xi32>
    %cst_4 = arith.constant 1.000000e+00 : f32
    %cst_5 = arith.constant 0.000000e+00 : f32
    %13 = vector.broadcast %cst_4 : f32 to vector<16x16xf32>
    %14 = vector.broadcast %cst_5 : f32 to vector<16x16xf32>
    %15 = arith.select %12, %13, %14 : vector<16x16xi1>, vector<16x16xf32>
    %cst_6 = arith.constant dense<0.000000e+00> : vector<16x128xf32>
    %16 = tpu.matmul %9, %1, %cst_6 {dimension_numbers = #tpu.dot_dimension_numbers<[1], [0], [0], [1], [0, 0, 1, 1], [], []>} : vector<16x16xf32>, vector<16x128xf32>, vector<16x128xf32> -> vector<16x128xf32>
    %cst_7 = arith.constant dense<0.000000e+00> : vector<16x128xf32>
    %17 = tpu.matmul %15, %1, %cst_7 {dimension_numbers = #tpu.dot_dimension_numbers<[1], [0], [0], [1], [0, 0, 1, 1], [], []>} : vector<16x16xf32>, vector<16x128xf32>, vector<16x128xf32> -> vector<16x128xf32>
    %c0_8 = arith.constant 0 : index
    %c0_9 = arith.constant 0 : index
    %c0_10 = arith.constant 0 : index
    %18 = vector.load %arg2[%c0_8, %c0_9, %c0_10] : memref<3x128x128xf32, #tpu.memory_space<vmem>>, vector<1x128x128xf32>
    %19 = vector.shape_cast %18 : vector<1x128x128xf32> to vector<128x128xf32>
    %cst_11 = arith.constant dense<0.000000e+00> : vector<16x128xf32>
    %20 = tpu.matmul %16, %19, %cst_11 {dimension_numbers = #tpu.dot_dimension_numbers<[1], [0], [0], [1], [0, 0, 1, 1], [], []>} : vector<16x128xf32>, vector<128x128xf32>, vector<16x128xf32> -> vector<16x128xf32>
    %c1 = arith.constant 1 : index
    %c0_12 = arith.constant 0 : index
    %c0_13 = arith.constant 0 : index
    %21 = vector.load %arg2[%c1, %c0_12, %c0_13] : memref<3x128x128xf32, #tpu.memory_space<vmem>>, vector<1x128x128xf32>
    %22 = vector.shape_cast %21 : vector<1x128x128xf32> to vector<128x128xf32>
    %cst_14 = arith.constant dense<0.000000e+00> : vector<16x128xf32>
    %23 = tpu.matmul %1, %22, %cst_14 {dimension_numbers = #tpu.dot_dimension_numbers<[1], [0], [0], [1], [0, 0, 1, 1], [], []>} : vector<16x128xf32>, vector<128x128xf32>, vector<16x128xf32> -> vector<16x128xf32>
    %24 = arith.addf %20, %23 : vector<16x128xf32>
    %c2 = arith.constant 2 : index
    %c0_15 = arith.constant 0 : index
    %c0_16 = arith.constant 0 : index
    %25 = vector.load %arg2[%c2, %c0_15, %c0_16] : memref<3x128x128xf32, #tpu.memory_space<vmem>>, vector<1x128x128xf32>
    %26 = vector.shape_cast %25 : vector<1x128x128xf32> to vector<128x128xf32>
    %cst_17 = arith.constant dense<0.000000e+00> : vector<16x128xf32>
    %27 = tpu.matmul %17, %26, %cst_17 {dimension_numbers = #tpu.dot_dimension_numbers<[1], [0], [0], [1], [0, 0, 1, 1], [], []>} : vector<16x128xf32>, vector<128x128xf32>, vector<16x128xf32> -> vector<16x128xf32>
    %28 = arith.addf %24, %27 : vector<16x128xf32>
    %c0_18 = arith.constant 0 : index
    %c0_19 = arith.constant 0 : index
    %29 = vector.load %arg3[%c0_18, %c0_19] : memref<1x128xf32, #tpu.memory_space<vmem>>, vector<1x128xf32>
    %30 = vector.broadcast %29 : vector<1x128xf32> to vector<16x128xf32>
    %31 = arith.addf %28, %30 : vector<16x128xf32>
    %cst_20 = arith.constant 0.000000e+00 : f32
    %32 = vector.broadcast %cst_20 : f32 to vector<16x128xf32>
    %33 = arith.maximumf %31, %32 : vector<16x128xf32>
    %cst_21 = arith.constant dense<0.000000e+00> : vector<16x128xf32>
    %34 = tpu.matmul %9, %33, %cst_21 {dimension_numbers = #tpu.dot_dimension_numbers<[1], [0], [0], [1], [0, 0, 1, 1], [], []>} : vector<16x16xf32>, vector<16x128xf32>, vector<16x128xf32> -> vector<16x128xf32>
    %cst_22 = arith.constant dense<0.000000e+00> : vector<16x128xf32>
    %35 = tpu.matmul %15, %33, %cst_22 {dimension_numbers = #tpu.dot_dimension_numbers<[1], [0], [0], [1], [0, 0, 1, 1], [], []>} : vector<16x16xf32>, vector<16x128xf32>, vector<16x128xf32> -> vector<16x128xf32>
    %c0_23 = arith.constant 0 : index
    %c0_24 = arith.constant 0 : index
    %c0_25 = arith.constant 0 : index
    %36 = vector.load %arg4[%c0_23, %c0_24, %c0_25] : memref<3x128x128xf32, #tpu.memory_space<vmem>>, vector<1x128x128xf32>
    %37 = vector.shape_cast %36 : vector<1x128x128xf32> to vector<128x128xf32>
    %cst_26 = arith.constant dense<0.000000e+00> : vector<16x128xf32>
    %38 = tpu.matmul %34, %37, %cst_26 {dimension_numbers = #tpu.dot_dimension_numbers<[1], [0], [0], [1], [0, 0, 1, 1], [], []>} : vector<16x128xf32>, vector<128x128xf32>, vector<16x128xf32> -> vector<16x128xf32>
    %c1_27 = arith.constant 1 : index
    %c0_28 = arith.constant 0 : index
    %c0_29 = arith.constant 0 : index
    %39 = vector.load %arg4[%c1_27, %c0_28, %c0_29] : memref<3x128x128xf32, #tpu.memory_space<vmem>>, vector<1x128x128xf32>
    %40 = vector.shape_cast %39 : vector<1x128x128xf32> to vector<128x128xf32>
    %cst_30 = arith.constant dense<0.000000e+00> : vector<16x128xf32>
    %41 = tpu.matmul %33, %40, %cst_30 {dimension_numbers = #tpu.dot_dimension_numbers<[1], [0], [0], [1], [0, 0, 1, 1], [], []>} : vector<16x128xf32>, vector<128x128xf32>, vector<16x128xf32> -> vector<16x128xf32>
    %42 = arith.addf %38, %41 : vector<16x128xf32>
    %c2_31 = arith.constant 2 : index
    %c0_32 = arith.constant 0 : index
    %c0_33 = arith.constant 0 : index
    %43 = vector.load %arg4[%c2_31, %c0_32, %c0_33] : memref<3x128x128xf32, #tpu.memory_space<vmem>>, vector<1x128x128xf32>
    %44 = vector.shape_cast %43 : vector<1x128x128xf32> to vector<128x128xf32>
    %cst_34 = arith.constant dense<0.000000e+00> : vector<16x128xf32>
    %45 = tpu.matmul %35, %44, %cst_34 {dimension_numbers = #tpu.dot_dimension_numbers<[1], [0], [0], [1], [0, 0, 1, 1], [], []>} : vector<16x128xf32>, vector<128x128xf32>, vector<16x128xf32> -> vector<16x128xf32>
    %46 = arith.addf %42, %45 : vector<16x128xf32>
    %c0_35 = arith.constant 0 : index
    %c0_36 = arith.constant 0 : index
    %47 = vector.load %arg5[%c0_35, %c0_36] : memref<1x128xf32, #tpu.memory_space<vmem>>, vector<1x128xf32>
    %48 = vector.broadcast %47 : vector<1x128xf32> to vector<16x128xf32>
    %49 = arith.addf %46, %48 : vector<16x128xf32>
    %50 = arith.addf %1, %49 : vector<16x128xf32>
    %c0_37 = arith.constant 0 : index
    %c0_38 = arith.constant 0 : index
    %c0_39 = arith.constant 0 : index
    %51 = vector.load %arg6[%c0_37, %c0_38, %c0_39] : memref<1x16x128xf32, #tpu.memory_space<vmem>>, vector<1x16x128xf32>
    %52 = vector.shape_cast %51 : vector<1x16x128xf32> to vector<16x128xf32>
    %53 = vector.shape_cast %50 : vector<16x128xf32> to vector<1x16x128xf32>
    tpu.vector_store %arg6[%c0_37, %c0_38, %c0_39], %53 {strides = array<i32>} : memref<1x16x128xf32, #tpu.memory_space<vmem>>, vector<1x16x128xf32>,
    return
  }
  func.func @transform_0(%arg0: i32) -> (i32, i32, i32) {
    %c0_i32 = arith.constant 0 : i32
    %c0_i32_0 = arith.constant 0 : i32
    %c0_i32_1 = arith.constant 0 : i32
    return %arg0, %c0_i32, %c0_i32_0 : i32, i32, i32
  }
  func.func @transform_1(%arg0: i32) -> (i32, i32, i32) {
    %c0_i32 = arith.constant 0 : i32
    %c0_i32_0 = arith.constant 0 : i32
    %c0_i32_1 = arith.constant 0 : i32
    %c0_i32_2 = arith.constant 0 : i32
    return %c0_i32, %c0_i32_0, %c0_i32_1 : i32, i32, i32
  }
  func.func @transform_2(%arg0: i32) -> (i32, i32) {
    %c0_i32 = arith.constant 0 : i32
    %c0_i32_0 = arith.constant 0 : i32
    %c0_i32_1 = arith.constant 0 : i32
    return %c0_i32, %c0_i32_0 : i32, i32
  }
  func.func @transform_3(%arg0: i32) -> (i32, i32, i32) {
    %c0_i32 = arith.constant 0 : i32
    %c0_i32_0 = arith.constant 0 : i32
    %c0_i32_1 = arith.constant 0 : i32
    %c0_i32_2 = arith.constant 0 : i32
    return %c0_i32, %c0_i32_0, %c0_i32_1 : i32, i32, i32
  }
  func.func @transform_4(%arg0: i32) -> (i32, i32) {
    %c0_i32 = arith.constant 0 : i32
    %c0_i32_0 = arith.constant 0 : i32
    %c0_i32_1 = arith.constant 0 : i32
    return %c0_i32, %c0_i32_0 : i32, i32
  }
  func.func @transform_5(%arg0: i32) -> (i32, i32, i32) {
    %c0_i32 = arith.constant 0 : i32
    %c0_i32_0 = arith.constant 0 : i32
    %c0_i32_1 = arith.constant 0 : i32
    return %arg0, %c0_i32, %c0_i32_0 : i32, i32, i32
  }
}

</mosaic_0001>

<bundles_post_ra>
// kernel: residual_block_forward.1
= control target key start
LH: loop header
LB: loop body
LE: loop exit
PB: predicated region body
PF: predicated region fallthrough
CT: control target
= control target key end

     0   :  { %s1905_s18 = smov 0   ;;  %s2256_s0 = inlined_call_operand.vmem [shape: f32[2,16,128], index: 0, kind: input, shape index: {}]   ;;  %s2257_s1 = inlined_call_operand.vmem [shape: f32[3,128,128], index: 1, kind: input, shape index: {}]   ;;  %s2258_s2 = inlined_call_operand.vmem [shape: f32[1,128], index: 2, kind: input, shape index: {}]   ;;  %s2259_s3 = inlined_call_operand.vmem [shape: f32[3,128,128], index: 3, kind: input, shape index: {}]   ;;  %s2260_s4 = inlined_call_operand.vmem [shape: f32[1,128], index: 4, kind: input, shape index: {}]   ;;  %s2261_s5 = inlined_call_operand.vmem [shape: f32[2,16,128], index: 5, kind: output, shape index: {}]  }
   0x1 LB: > { %s1190_s19 = sadd.s32 4294967295, %s1872_s18   ;;  %p1194_p0 = scmp.ge.s32.totalorder %s1872_s18, 1  ;;  %s1872_s18 = sphi %s1905_s18, %s15_s18  }
   0x2   : > { %p187_p1 = scmp.lt.s32.totalorder %s1872_s18, 3 }
   0x4   : > { %p188_p2 = pnand %p1194_p0, %p187_p1 }
   0x5   : > { %p215_p3 = scmp.lt.s32.totalorder (!%p188_p2), %s1190_s19, 1  ;;  %v227_v0 = vlaneseq (!%p188_p2)  ;;  %vm244_vm0 = vcmask (!%p188_p2), 130048   ;;  %v1874_v10 = vmov (!%p188_p2), 0.0   ;;  %v1205_v13 = vld [vmem:[%s2257_s1 + $0x80] sm:$0xff] (!%p188_p2)  ;;  %v1206_v14 = vld [vmem:[%s2257_s1 + $0x88] sm:$0xff] (!%p188_p2)  ;;  %v1207_v18 = vld [vmem:[%s2257_s1 + $0x90] sm:$0xff] (!%p188_p2) }
   0x6   : > { %191 = sbr.rel (%p188_p2) target bundleno = 956 (0x3bc), region = 40  ;;  %v1649_v17 = vpack.c.bf16 (!%p188_p2), %v1206_v14, %v1205_v13  ;;  %v1208_v19 = vld [vmem:[%s2257_s1 + $0x98] sm:$0xff] (!%p188_p2)  ;;  %v1209_v22 = vld [vmem:[%s2257_s1 + $0xa0] sm:$0xff] (!%p188_p2)  ;;  %v1210_v23 = vld [vmem:[%s2257_s1 + $0xa8] sm:$0xff] (!%p188_p2) }
   0x7   : > { %v228_v1 = vshrl.u32 (!%p188_p2), %v227_v0, 7  ;;  %v231_v2 = vand.u32 (!%p188_p2), 127, %v227_v0  ;;  %v1653_v21 = vpack.c.bf16 (!%p188_p2), %v1208_v19, %v1207_v18  ;;  %v1657_v24 = vpack.c.bf16 (!%p188_p2), %v1210_v23, %v1209_v22  ;;  %v1211_v25 = vld [vmem:[%s2257_s1 + $0xb0] sm:$0xff] (!%p188_p2)  ;;  %v1212_v26 = vld [vmem:[%s2257_s1 + $0xb8] sm:$0xff] (!%p188_p2)  ;;  %v1213_v28 = vld [vmem:[%s2257_s1 + $0xc0] sm:$0xff] (!%p188_p2) }
   0x8   : > { %v1661_v27 = vpack.c.bf16 (!%p188_p2), %v1212_v26, %v1211_v25  ;;  %v1214_v29 = vld [vmem:[%s2257_s1 + $0xc8] sm:$0xff] (!%p188_p2)  ;;  %v1215_v31 = vld [vmem:[%s2257_s1 + $0xd0] sm:$0xff] (!%p188_p2)  ;;  %v1216_v32 = vld [vmem:[%s2257_s1 + $0xd8] sm:$0xff] (!%p188_p2) }
   0x9   : > { %v1199_v3 = vadd.s32 (!%p188_p2), 4294967295, %v228_v1  ;;  %v229_v4 = vadd.s32 (!%p188_p2), 8, %v228_v1  ;;  %v238_v5 = vadd.s32 (!%p188_p2), 1, %v228_v1  ;;  %v1665_v30 = vpack.c.bf16 (!%p188_p2), %v1214_v29, %v1213_v28  ;;  %v1217_v34 = vld [vmem:[%s2257_s1 + $0xe0] sm:$0xff] (!%p188_p2)  ;;  %v1218_v35 = vld [vmem:[%s2257_s1 + $0xe8] sm:$0xff] (!%p188_p2)  ;;  %v1219_v37 = vld [vmem:[%s2257_s1 + $0xf0] sm:$0xff] (!%p188_p2) }
   0xa   : > { %v1669_v33 = vpack.c.bf16 (!%p188_p2), %v1216_v32, %v1215_v31  ;;  %v1673_v36 = vpack.c.bf16 (!%p188_p2), %v1218_v35, %v1217_v34  ;;  %v1220_v38 = vld [vmem:[%s2257_s1 + $0xf8] sm:$0xff] (!%p188_p2)  ;;  %v407_v40 = vld [vmem:[%s2257_s1] sm:$0xff] (!%p188_p2)  ;;  %v408_v41 = vld [vmem:[%s2257_s1 + $0x8] sm:$0xff] (!%p188_p2) }
   0xb   : > { %vm234_vm1 = vcmp.eq.s32.totalorder (!%p188_p2), %v231_v2, %v1199_v3  ;;  %v1200_v8 = vadd.s32 (!%p188_p2), 4294967295, %v229_v4  ;;  %v239_v12 = vadd.s32 (!%p188_p2), 1, %v229_v4  ;;  %vm240_vm3 = vcmp.eq.s32.totalorder (!%p188_p2), %v231_v2, %v238_v5  ;;  %v409_v43 = vld [vmem:[%s2257_s1 + $0x10] sm:$0xff] (!%p188_p2)  ;;  %v410_v44 = vld [vmem:[%s2257_s1 + $0x18] sm:$0xff] (!%p188_p2)  ;;  %v411_v46 = vld [vmem:[%s2257_s1 + $0x20] sm:$0xff] (!%p188_p2) }
   0xc   : > { %v236_v11 = vsel (!%p188_p2), %vm234_vm1, 1.0, %v1874_v10  ;;  %v1937_v16 = vsel (!%p188_p2), %vm240_vm3, 1.0, %v1874_v10  ;;  %v1677_v39 = vpack.c.bf16 (!%p188_p2), %v1220_v38, %v1219_v37  ;;  %v1681_v42 = vpack.c.bf16 (!%p188_p2), %v408_v41, %v407_v40  ;;  %v412_v47 = vld [vmem:[%s2257_s1 + $0x28] sm:$0xff] (!%p188_p2)  ;;  %v413_v49 = vld [vmem:[%s2257_s1 + $0x30] sm:$0xff] (!%p188_p2)  ;;  %v414_v50 = vld [vmem:[%s2257_s1 + $0x38] sm:$0xff] (!%p188_p2) }
   0xd   : > { %s2263_s19 = smov (!%p215_p3, %s1190_s19), 1  ;;  %1407 = vmatprep.mubr.msk.f32.mxu0 %vm244_vm0, %v236_v11  ;;  %vm235_vm2 = vcmp.eq.s32.totalorder %v231_v2, %v1200_v8  ;;  %1526 = vmatprep.mubr.msk.f32.mxu1 %vm244_vm0, %v236_v11  ;;  %vm241_vm4 = vcmp.eq.s32.totalorder %v231_v2, %v239_v12  ;;  %v1685_v45 = vpack.c.bf16 %v410_v44, %v409_v43  ;;  %v415_v52 = vld [vmem:[%s2257_s1 + $0x40] sm:$0xff]  ;;  %v416_v53 = vld [vmem:[%s2257_s1 + $0x48] sm:$0xff]  ;;  %v417_v55 = vld [vmem:[%s2257_s1 + $0x50] sm:$0xff] }
   0xe   : > { %s1277_s20 = sshll.u32 %s2263_s19, 4  ;;  %v1935_v15 = vsel %vm235_vm2, 1.0, %v1874_v10  ;;  %v1949_v20 = vsel %vm241_vm4, 1.0, %v1874_v10  ;;  %v1689_v48 = vpack.c.bf16 %v412_v47, %v411_v46  ;;  %v1693_v51 = vpack.c.bf16 %v414_v50, %v413_v49  ;;  %v418_v56 = vld [vmem:[%s2257_s1 + $0x58] sm:$0xff]  ;;  %v419_v58 = vld [vmem:[%s2257_s1 + $0x60] sm:$0xff]  ;;  %v420_v59 = vld [vmem:[%s2257_s1 + $0x68] sm:$0xff] }
   0xf   : > { %s219_s23 = scalar_lea.vmem %s2256_s0, %s1277_s20  ;;  %v1697_v54 = vpack.c.bf16 %v416_v53, %v415_v52  ;;  %v1701_v57 = vpack.c.bf16 %v418_v56, %v417_v55  ;;  %v1705_v60 = vpack.c.bf16 %v420_v59, %v419_v58  ;;  %v421_v61 = vld [vmem:[%s2257_s1 + $0x70] sm:$0xff]  ;;  %v422_v62 = vld [vmem:[%s2257_s1 + $0x78] sm:$0xff]  ;;  %v1221_v0 = vld [vmem:[%s2257_s1 + $0x100] sm:$0xff]  ;;  %s224_s24 = scalar_lea.vmem %s2261_s5, %s1277_s20 }
  0x10   : > { %v1921_v6 = vld [vmem:[%s219_s23] sm:$0xff]  ;;  %v1923_v7 = vld [vmem:[%s219_s23 + $0x8] sm:$0xff]  ;;  %v1709_v63 = vpack.c.bf16 %v422_v62, %v421_v61  ;;  %v1223_v3 = vld [vmem:[%s2257_s1 + $0x110] sm:$0xff] }
  0x11   : > { %v1641_v9 = vpack.c.bf16 %v1923_v7, %v1921_v6  ;;  %v1222_v1 = vld [vmem:[%s2257_s1 + $0x108] sm:$0xff]  ;;  %v1224_v4 = vld [vmem:[%s2257_s1 + $0x118] sm:$0xff]  ;;  %v1225_v10 = vld [vmem:[%s2257_s1 + $0x120] sm:$0xff] }
  0x12   : > { %v1713_v2 = vpack.c.bf16 %v1222_v1, %v1221_v0  ;;  %v1226_v11 = vld [vmem:[%s2257_s1 + $0x128] sm:$0xff]  ;;  %v1228_v18 = vld [vmem:[%s2257_s1 + $0x138] sm:$0xff]  ;;  %v1242_v41 = vld [vmem:[%s2259_s3 + $0x80] sm:$0xff] }
  0x13   : > { %1642 = vmatprep.subr.bf16.mxu0 %v1641_v9  ;;  %v1721_v13 = vpack.c.bf16 %v1226_v11, %v1225_v10  ;;  %v1230_v22 = vld [vmem:[%s2257_s1 + $0x148] sm:$0xff]  ;;  %v1232_v25 = vld [vmem:[%s2257_s1 + $0x158] sm:$0xff]  ;;  %v1244_v44 = vld [vmem:[%s2259_s3 + $0x90] sm:$0xff] }
  0x14   : > { %1644 = vmatpush3.bf16.msra.mxu0 %v1641_v9  ;;  %v1234_v28 = vld [vmem:[%s2257_s1 + $0x168] sm:$0xff]  ;;  %v1236_v31 = vld [vmem:[%s2257_s1 + $0x178] sm:$0xff]  ;;  %v1246_v47 = vld [vmem:[%s2259_s3 + $0xa0] sm:$0xff] }
  0x15   : > { %1646 = vmatprep.subr.bf16.mxu0 %v1641_v9  ;;  %v1249_v49 = vld [vmem:[%s2259_s3 + $0xb8] sm:$0xff]  ;;  %v1252_v53 = vld [vmem:[%s2259_s3 + $0xd0] sm:$0xff]  ;;  %v1254_v56 = vld [vmem:[%s2259_s3 + $0xe0] sm:$0xff] }
  0x16   : > { %v1256_v59 = vld [vmem:[%s2259_s3 + $0xf0] sm:$0xff]  ;;  %v845_v62 = vld [vmem:[%s2259_s3] sm:$0xff]  ;;  %v852_v10 = vld [vmem:[%s2259_s3 + $0x38] sm:$0xff] }
  0x17   : > { %1408 = vmatmul.mubr.msk.f32.vlgmr.msra.gmra.mrb[0].mxu0 %vm244_vm0, %v1935_v15  ;;  %v847_v1 = vld [vmem:[%s2259_s3 + $0x10] sm:$0xff] }
  0x18   : > { %1648 = vmatpush3.bf16.msra.mxu0 %v1641_v9  ;;  %1414 = vmatprep.mubr.msk.f32.mxu0 %vm244_vm0, %v1937_v16  ;;  %v1717_v9 = vpack.c.bf16 %v1224_v4, %v1223_v3  ;;  %v849_v4 = vld [vmem:[%s2259_s3 + $0x20] sm:$0xff] }
  0x19   : > { %1650 = vmatprep.subr.bf16.mxu0 %v1649_v17 }
  0x1b   : > { %1415 = vmatmul.mubr.msk.f32.vlgmr.msra.gmra.mrb[2].mxu0 %vm244_vm0, %v1949_v20 }
  0x1c   : > { %1652 = vmatpush3.bf16.msra.mxu0 %v1649_v17  ;;  %1449 = vmatprep.mubr.f32.mxu0 %v1921_v6  ;;  %v1227_v17 = vld [vmem:[%s2257_s1 + $0x130] sm:$0xff] }
  0x1d   : > { %1654 = vmatprep.subr.bf16.mxu0 %v1653_v21  ;;  %v1725_v19 = vpack.c.bf16 %v1228_v18, %v1227_v17  ;;  %v855_v17 = vld [vmem:[%s2259_s3 + $0x50] sm:$0xff]  ;;  %v856_v18 = vld [vmem:[%s2259_s3 + $0x58] sm:$0xff] }
  0x20   : > { %1656 = vmatpush3.bf16.msra.mxu0 %v1653_v21  ;;  %v1229_v21 = vld [vmem:[%s2257_s1 + $0x140] sm:$0xff] }
  0x21   : > { %1658 = vmatprep.subr.bf16.mxu0 %v1657_v24  ;;  %v1729_v23 = vpack.c.bf16 %v1230_v22, %v1229_v21  ;;  %v857_v21 = vld [vmem:[%s2259_s3 + $0x60] sm:$0xff]  ;;  %v858_v22 = vld [vmem:[%s2259_s3 + $0x68] sm:$0xff] }
  0x24   : > { %1660 = vmatpush3.bf16.msra.mxu0 %v1657_v24  ;;  %v1231_v24 = vld [vmem:[%s2257_s1 + $0x150] sm:$0xff] }
  0x25   : > { %1662 = vmatprep.subr.bf16.mxu0 %v1661_v27  ;;  %v1733_v26 = vpack.c.bf16 %v1232_v25, %v1231_v24  ;;  %v859_v24 = vld [vmem:[%s2259_s3 + $0x70] sm:$0xff]  ;;  %v860_v25 = vld [vmem:[%s2259_s3 + $0x78] sm:$0xff] }
  0x28   : > { %1664 = vmatpush3.bf16.msra.mxu0 %v1661_v27  ;;  %v1233_v27 = vld [vmem:[%s2257_s1 + $0x160] sm:$0xff] }
  0x29   : > { %1666 = vmatprep.subr.bf16.mxu0 %v1665_v30  ;;  %v1737_v29 = vpack.c.bf16 %v1234_v28, %v1233_v27  ;;  %v1258_v27 = vld [vmem:[%s2259_s3 + $0x100] sm:$0xff]  ;;  %v1259_v28 = vld [vmem:[%s2259_s3 + $0x108] sm:$0xff] }
  0x2c   : > { %1668 = vmatpush3.bf16.msra.mxu0 %v1665_v30  ;;  %v1235_v30 = vld [vmem:[%s2257_s1 + $0x170] sm:$0xff] }
  0x2d   : > { %1670 = vmatprep.subr.bf16.mxu0 %v1669_v33  ;;  %v1741_v32 = vpack.c.bf16 %v1236_v31, %v1235_v30  ;;  %v1260_v30 = vld [vmem:[%s2259_s3 + $0x110] sm:$0xff]  ;;  %v1261_v31 = vld [vmem:[%s2259_s3 + $0x118] sm:$0xff] }
  0x30   : > { %1672 = vmatpush3.bf16.msra.mxu0 %v1669_v33  ;;  %v1237_v33 = vld [vmem:[%s2258_s2] ss:$0 sm:$0xff] }
  0x31   : > { %1674 = vmatprep.subr.bf16.mxu0 %v1673_v36 }
  0x34   : > { %1676 = vmatpush3.bf16.msra.mxu0 %v1673_v36 }
  0x35   : > { %1678 = vmatprep.subr.bf16.mxu0 %v1677_v39 }
  0x38   : > { %1680 = vmatpush3.bf16.msra.mxu0 %v1677_v39 }
  0x39   : > { %1682 = vmatprep.subr.bf16.mxu0 %v1681_v42 }
  0x3b   : > { %1450 = vmatmul.mubr.f32.vlgmr.msra.gmra.mrb[4].mxu0 %v1923_v7 }
  0x3c   : > { %1684 = vmatpush3.bf16.msra.mxu0 %v1681_v42  ;;  %v1243_v42 = vld [vmem:[%s2259_s3 + $0x88] sm:$0xff] }
  0x3d   : > { %1686 = vmatprep.subr.bf16.mxu0 %v1685_v45  ;;  %v1753_v43 = vpack.c.bf16 %v1243_v42, %v1242_v41  ;;  %v1265_v41 = vld [vmem:[%s2259_s3 + $0x138] sm:$0xff] }
  0x40   : > { %1688 = vmatpush3.bf16.msra.mxu0 %v1685_v45  ;;  %v1245_v45 = vld [vmem:[%s2259_s3 + $0x98] sm:$0xff] }
  0x41   : > { %1690 = vmatprep.subr.bf16.mxu0 %v1689_v48  ;;  %v1757_v46 = vpack.c.bf16 %v1245_v45, %v1244_v44  ;;  %v1267_v44 = vld [vmem:[%s2259_s3 + $0x148] sm:$0xff] }
  0x44   : > { %1692 = vmatpush3.bf16.msra.mxu0 %v1689_v48  ;;  %v1247_v48 = vld [vmem:[%s2259_s3 + $0xa8] sm:$0xff] }
  0x45   : > { %1694 = vmatprep.subr.bf16.mxu0 %v1693_v51 }
  0x48   : > { %1696 = vmatpush3.bf16.msra.mxu0 %v1693_v51  ;;  %v1250_v51 = vld [vmem:[%s2259_s3 + $0xc0] sm:$0xff] }
  0x49   : > { %1698 = vmatprep.subr.bf16.mxu0 %v1697_v54 }
  0x4c   : > { %1700 = vmatpush3.bf16.msra.mxu0 %v1697_v54  ;;  %v1253_v54 = vld [vmem:[%s2259_s3 + $0xd8] sm:$0xff] }
  0x4d   : > { %1702 = vmatprep.subr.bf16.mxu0 %v1701_v57  ;;  %v1773_v55 = vpack.c.bf16 %v1253_v54, %v1252_v53 }
  0x50   : > { %1704 = vmatpush3.bf16.msra.mxu0 %v1701_v57  ;;  %v1255_v57 = vld [vmem:[%s2259_s3 + $0xe8] sm:$0xff] }
  0x51   : > { %1706 = vmatprep.subr.bf16.mxu0 %v1705_v60  ;;  %v1777_v58 = vpack.c.bf16 %v1255_v57, %v1254_v56 }
  0x54   : > { %1708 = vmatpush3.bf16.msra.mxu0 %v1705_v60  ;;  %v1257_v60 = vld [vmem:[%s2259_s3 + $0xf8] sm:$0xff] }
  0x55   : > { %1710 = vmatprep.subr.bf16.mxu0 %v1709_v63  ;;  %v1781_v61 = vpack.c.bf16 %v1257_v60, %v1256_v59 }
  0x58   : > { %1712 = vmatpush3.bf16.msra.mxu0 %v1709_v63  ;;  %v846_v63 = vld [vmem:[%s2259_s3 + $0x8] sm:$0xff] }
  0x59   : > { %1714 = vmatprep.subr.bf16.mxu0 %v1713_v2  ;;  %v1785_v0 = vpack.c.bf16 %v846_v63, %v845_v62 }
  0xea   : > { %v1409_v5 = vpop.f32.mrb[0].mxu0 }
  0xeb   : > { %v317_v8 = vpop.f32.mrb[1].mxu0 }
  0xec   : > { %1484 = vmatprep.mubr.f32.mxu0 %v317_v8 }
  0xed   : > { %1485 = vmatmul.mubr.f32.vlgmr.msra.gmra.mrb[4].mxu0 %v1409_v5  ;;  %v850_v5 = vld [vmem:[%s2259_s3 + $0x28] sm:$0xff] }
  0xee   : > { %1716 = vmatpush3.bf16.msra.mxu0 %v1713_v2  ;;  %v1416_v12 = vpop.f32.mrb[2].mxu0  ;;  %v848_v2 = vld [vmem:[%s2259_s3 + $0x18] sm:$0xff]  ;;  %v1793_v8 = vpack.c.bf16 %v850_v5, %v849_v4 }
  0xef   : > { %1718 = vmatprep.subr.bf16.mxu0 %v1717_v9  ;;  %v398_v14 = vpop.f32.mrb[3].mxu0  ;;  %v1789_v3 = vpack.c.bf16 %v848_v2, %v847_v1 }
  0xf0   : > { %1519 = vmatprep.mubr.f32.mxu0 %v398_v14 }
  0xf2   : > { %1720 = vmatpush3.bf16.msra.mxu0 %v1717_v9  ;;  %v851_v9 = vld [vmem:[%s2259_s3 + $0x30] sm:$0xff] }
  0xf3   : > { %1722 = vmatprep.subr.bf16.mxu0 %v1721_v13  ;;  %v1797_v11 = vpack.c.bf16 %v852_v10, %v851_v9 }
  0xf6   : > { %1724 = vmatpush3.bf16.msra.mxu0 %v1721_v13  ;;  %v854_v13 = vld [vmem:[%s2259_s3 + $0x48] sm:$0xff] }
  0xf7   : > { %1726 = vmatprep.subr.bf16.mxu0 %v1725_v19 }
  0xfa   : > { %1728 = vmatpush3.bf16.msra.mxu0 %v1725_v19  ;;  %v1805_v19 = vpack.c.bf16 %v856_v18, %v855_v17 }
  0xfb   : > { %1730 = vmatprep.subr.bf16.mxu0 %v1729_v23 }
  0xfe   : > { %1732 = vmatpush3.bf16.msra.mxu0 %v1729_v23  ;;  %v1809_v23 = vpack.c.bf16 %v858_v22, %v857_v21 }
  0xff   : > { %1734 = vmatprep.subr.bf16.mxu0 %v1733_v26 }
 0x102   : > { %1736 = vmatpush3.bf16.msra.mxu0 %v1733_v26  ;;  %v1813_v26 = vpack.c.bf16 %v860_v25, %v859_v24 }
 0x103   : > { %1738 = vmatprep.subr.bf16.mxu0 %v1737_v29 }
 0x106   : > { %1740 = vmatpush3.bf16.msra.mxu0 %v1737_v29  ;;  %v1817_v29 = vpack.c.bf16 %v1259_v28, %v1258_v27 }
 0x107   : > { %1742 = vmatprep.subr.bf16.mxu0 %v1741_v32 }
 0x10a   : > { %1744 = vmatpush3.bf16.msra.mxu0 %v1741_v32 }
 0x10d   : > { %1520 = vmatmul.mubr.f32.vlgmr.msra.gmra.mrb[4].mxu0 %v1416_v12  ;;  %v853_v12 = vld [vmem:[%s2259_s3 + $0x40] sm:$0xff] }
 0x10e   : > { %v1801_v14 = vpack.c.bf16 %v854_v13, %v853_v12 }
 0x1e0   : > { %v1521_v34 = vpop.f32.mrb[4].mxu0 }
 0x1e1   : > { %v2090_v35 = vadd.f32 %v1521_v34, %v1237_v33  ;;  %v673_v36 = vpop.f32.mrb[5].mxu0  ;;  %v1821_v34 = vpack.c.bf16 %v1261_v31, %v1260_v30 }
 0x1e2   : > { %v691_v37 = vadd.f32 %v1237_v33, %v673_v36  ;;  %v1263_v36 = vld [vmem:[%s2259_s3 + $0x128] sm:$0xff] }
 0x1e3   : > { %v694_v38 = vmax.f32 %v2090_v35, 0.0  ;;  %v1262_v35 = vld [vmem:[%s2259_s3 + $0x120] sm:$0xff] }
 0x1e4   : > { %v693_v39 = vmax.f32 %v691_v37, 0.0 }
 0x1e6   : > { %v1745_v40 = vpack.c.bf16 %v694_v38, %v693_v39 }
 0x1e8   : > { %1746 = vmatprep.subr.bf16.mxu1 %v1745_v40 }
 0x1e9   : > { %1748 = vmatpush3.bf16.msra.mxu1 %v1745_v40 }
 0x1ea   : > { %1750 = vmatprep.subr.bf16.mxu1 %v1745_v40 }
 0x1ec   : > { %1527 = vmatmul.mubr.msk.f32.vlgmr.msra.gmra.mrb[0].mxu1 %vm244_vm0, %v1935_v15  ;;  %v1761_v15 = vpack.c.bf16 %v1247_v48, %v1246_v47  ;;  %v1269_v47 = vld [vmem:[%s2259_s3 + $0x158] sm:$0xff] }
 0x1ed   : > { %1752 = vmatpush3.bf16.msra.mxu1 %v1745_v40  ;;  %1533 = vmatprep.mubr.msk.f32.mxu1 %vm244_vm0, %v1937_v16  ;;  %v1248_v16 = vld [vmem:[%s2259_s3 + $0xb0] sm:$0xff] }
 0x1ee   : > { %1754 = vmatprep.subr.bf16.mxu1 %v1753_v43  ;;  %v1765_v50 = vpack.c.bf16 %v1249_v49, %v1248_v16  ;;  %v1264_v40 = vld [vmem:[%s2259_s3 + $0x130] sm:$0xff]  ;;  %v1271_v16 = vld [vmem:[%s2259_s3 + $0x168] sm:$0xff] }
 0x1ef   : > { %v1829_v42 = vpack.c.bf16 %v1265_v41, %v1264_v40 }
 0x1f0   : > { %1534 = vmatmul.mubr.msk.f32.vlgmr.msra.gmra.mrb[2].mxu1 %vm244_vm0, %v1949_v20  ;;  %v1251_v20 = vld [vmem:[%s2259_s3 + $0xc8] sm:$0xff] }
 0x1f1   : > { %1756 = vmatpush3.bf16.msra.mxu1 %v1753_v43  ;;  %1568 = vmatprep.mubr.f32.mxu1 %v693_v39  ;;  %v1769_v52 = vpack.c.bf16 %v1251_v20, %v1250_v51  ;;  %v1266_v43 = vld [vmem:[%s2259_s3 + $0x140] sm:$0xff]  ;;  %v1273_v51 = vld [vmem:[%s2259_s3 + $0x178] sm:$0xff] }
 0x1f2   : > { %1758 = vmatprep.subr.bf16.mxu1 %v1757_v46  ;;  %v1833_v45 = vpack.c.bf16 %v1267_v44, %v1266_v43 }
 0x1f5   : > { %1760 = vmatpush3.bf16.msra.mxu1 %v1757_v46  ;;  %v1268_v46 = vld [vmem:[%s2259_s3 + $0x150] sm:$0xff] }
 0x1f6   : > { %1762 = vmatprep.subr.bf16.mxu1 %v1761_v15  ;;  %v1837_v48 = vpack.c.bf16 %v1269_v47, %v1268_v46 }
 0x1f9   : > { %1764 = vmatpush3.bf16.msra.mxu1 %v1761_v15  ;;  %v1270_v15 = vld [vmem:[%s2259_s3 + $0x160] sm:$0xff] }
 0x1fa   : > { %1766 = vmatprep.subr.bf16.mxu1 %v1765_v50  ;;  %v1841_v49 = vpack.c.bf16 %v1271_v16, %v1270_v15 }
 0x1fd   : > { %1768 = vmatpush3.bf16.msra.mxu1 %v1765_v50  ;;  %v1272_v50 = vld [vmem:[%s2259_s3 + $0x170] sm:$0xff] }
 0x1fe   : > { %1770 = vmatprep.subr.bf16.mxu1 %v1769_v52  ;;  %v1845_v20 = vpack.c.bf16 %v1273_v51, %v1272_v50 }
 0x201   : > { %1772 = vmatpush3.bf16.msra.mxu1 %v1769_v52  ;;  %v1274_v52 = vld [vmem:[%s2260_s4] ss:$0 sm:$0xff] }
 0x202   : > { %1774 = vmatprep.subr.bf16.mxu1 %v1773_v55 }
 0x205   : > { %1776 = vmatpush3.bf16.msra.mxu1 %v1773_v55 }
 0x206   : > { %1778 = vmatprep.subr.bf16.mxu1 %v1777_v58 }
 0x209   : > { %1780 = vmatpush3.bf16.msra.mxu1 %v1777_v58 }
 0x20a   : > { %1782 = vmatprep.subr.bf16.mxu1 %v1781_v61 }
 0x20d   : > { %1784 = vmatpush3.bf16.msra.mxu1 %v1781_v61 }
 0x20e   : > { %1786 = vmatprep.subr.bf16.mxu1 %v1785_v0 }
 0x210   : > { %1569 = vmatmul.mubr.f32.vlgmr.msra.gmra.mrb[4].mxu1 %v694_v38  ;;  %v1825_v38 = vpack.c.bf16 %v1263_v36, %v1262_v35 }
 0x211   : > { %1788 = vmatpush3.bf16.msra.mxu1 %v1785_v0 }
 0x212   : > { %1790 = vmatprep.subr.bf16.mxu1 %v1789_v3 }
 0x215   : > { %1792 = vmatpush3.bf16.msra.mxu1 %v1789_v3 }
 0x216   : > { %1794 = vmatprep.subr.bf16.mxu1 %v1793_v8 }
 0x219   : > { %1796 = vmatpush3.bf16.msra.mxu1 %v1793_v8 }
 0x21a   : > { %1798 = vmatprep.subr.bf16.mxu1 %v1797_v11 }
 0x21d   : > { %1800 = vmatpush3.bf16.msra.mxu1 %v1797_v11 }
 0x21e   : > { %1802 = vmatprep.subr.bf16.mxu1 %v1801_v14 }
 0x221   : > { %1804 = vmatpush3.bf16.msra.mxu1 %v1801_v14 }
 0x222   : > { %1806 = vmatprep.subr.bf16.mxu1 %v1805_v19 }
 0x225   : > { %1808 = vmatpush3.bf16.msra.mxu1 %v1805_v19 }
 0x226   : > { %1810 = vmatprep.subr.bf16.mxu1 %v1809_v23 }
 0x229   : > { %1812 = vmatpush3.bf16.msra.mxu1 %v1809_v23 }
 0x22a   : > { %1814 = vmatprep.subr.bf16.mxu1 %v1813_v26 }
 0x22d   : > { %1816 = vmatpush3.bf16.msra.mxu1 %v1813_v26 }
 0x22e   : > { %1818 = vmatprep.subr.bf16.mxu1 %v1817_v29 }
 0x2bf   : > { %v1528_v32 = vpop.f32.mrb[0].mxu1 }
 0x2c0   : > { %v761_v33 = vpop.f32.mrb[1].mxu1 }
 0x2c1   : > { %1603 = vmatprep.mubr.f32.mxu1 %v761_v33 }
 0x2c2   : > { %1604 = vmatmul.mubr.f32.vlgmr.msra.gmra.mrb[4].mxu1 %v1528_v32 }
 0x2c3   : > { %1820 = vmatpush3.bf16.msra.mxu1 %v1817_v29  ;;  %v1535_v37 = vpop.f32.mrb[2].mxu1 }
 0x2c4   : > { %1822 = vmatprep.subr.bf16.mxu1 %v1821_v34  ;;  %v836_v39 = vpop.f32.mrb[3].mxu1 }
 0x2c5   : > { %1638 = vmatprep.mubr.f32.mxu1 %v836_v39 }
 0x2c7   : > { %1824 = vmatpush3.bf16.msra.mxu1 %v1821_v34 }
 0x2c8   : > { %1826 = vmatprep.subr.bf16.mxu1 %v1825_v38 }
 0x2cb   : > { %1828 = vmatpush3.bf16.msra.mxu1 %v1825_v38 }
 0x2cc   : > { %1830 = vmatprep.subr.bf16.mxu1 %v1829_v42 }
 0x2cf   : > { %1832 = vmatpush3.bf16.msra.mxu1 %v1829_v42 }
 0x2d0   : > { %1834 = vmatprep.subr.bf16.mxu1 %v1833_v45 }
 0x2d3   : > { %1836 = vmatpush3.bf16.msra.mxu1 %v1833_v45 }
 0x2d4   : > { %1838 = vmatprep.subr.bf16.mxu1 %v1837_v48 }
 0x2d7   : > { %1840 = vmatpush3.bf16.msra.mxu1 %v1837_v48 }
 0x2d8   : > { %1842 = vmatprep.subr.bf16.mxu1 %v1841_v49 }
 0x2db   : > { %1844 = vmatpush3.bf16.msra.mxu1 %v1841_v49 }
 0x2dc   : > { %1846 = vmatprep.subr.bf16.mxu1 %v1845_v20 }
 0x2df   : > { %1848 = vmatpush3.bf16.msra.mxu1 %v1845_v20 }
 0x2e2   : > { %1639 = vmatmul.mubr.f32.vlgmr.msra.gmra.mrb[4].mxu1 %v1535_v37 }
 0x3b5   : > { %v1640_v53 = vpop.f32.mrb[4].mxu1 }
 0x3b6   : > { %v1130_v54 = vadd.f32 %v1640_v53, %v1274_v52  ;;  %v1111_v55 = vpop.f32.mrb[5].mxu1 }
 0x3b7   : > { %v1129_v56 = vadd.f32 %v1274_v52, %v1111_v55 }
 0x3b8   : > { %v1132_v57 = vadd.f32 %v1130_v54, %v1923_v7 }
 0x3b9   : > { %v1131_v58 = vadd.f32 %v1129_v56, %v1921_v6 }
 0x3ba   : > { %1134 = vst [vmem:[%s224_s24 + $0x8] sm:$0xff] %v1132_v57 }
 0x3bb   : > { %1133 = vst [vmem:[%s224_s24] sm:$0xff] %v1131_v58 }
 0x3bc PF: > { %s15_s18 = sadd.s32 1, %s1872_s18  }
 0x3bd   : > { %p12_p4 = scmp.ge.s32.totalorder %s15_s18, 4  }
 0x3bf   :  { %14 = sbr.rel (!%p12_p4) target bundleno = 1 (0x1), region = 74 }

</bundles_post_ra>
